<compile_context>
chip_gen: v7x
topology: tpu7x:2x2x1
jax: 0.10.0
libtpu: 0.0.40
codegen_flags: <defaults>
</compile_context>

<pallas_src>
import functools

import jax
import jax.numpy as jnp
from jax.experimental import pallas as pl
from jax.experimental.pallas import tpu as pltpu

LANE = 128


def _round_up(x: int, m: int) -> int:
    return ((x + m - 1) // m) * m


def _maybe_pad2d(x, rows: int, cols: int):
    R, C = x.shape
    if R == rows and C == cols:
        return x
    return jnp.pad(x, ((0, rows - R), (0, cols - C)))


# --------------------------------------------------------------------------- #
# Kernels
# --------------------------------------------------------------------------- #
def _hw_kernel(h_ref, w_ref, hw_ref):
    # HW = H @ W.  Operands are cast to the MXU dtype in-kernel (no wrapper
    # pre-pass over H/W), f32 accumulation on the MXU, stored in the MXU dtype.
    hw_ref[...] = jnp.dot(
        h_ref[...].astype(hw_ref.dtype),
        w_ref[...].astype(hw_ref.dtype),
        preferred_element_type=jnp.float32,
    ).astype(hw_ref.dtype)


def _agg_resident_kernel(a_ref, hw_ref, b_ref, o_ref):
    # out_row_strip = ReLU( A_row_strip @ HW + b ), HW fully resident in VMEM.
    a = a_ref[...].astype(hw_ref.dtype)          # in-kernel cast of the A stream
    acc = jnp.dot(a, hw_ref[...], preferred_element_type=jnp.float32)
    o_ref[...] = jnp.maximum(acc + b_ref[...], 0.0).astype(o_ref.dtype)


def _agg_ktiled_kernel(a_ref, hw_ref, b_ref, o_ref, acc_ref, *, hw_resident, tile_k):
    # Fallback for very large N: contraction tiled, f32 accumulator scratch.
    k = pl.program_id(1)

    @pl.when(k == 0)
    def _():
        acc_ref[...] = jnp.zeros_like(acc_ref)

    a = a_ref[...].astype(hw_ref.dtype)
    if hw_resident:
        start = pl.multiple_of(k * tile_k, tile_k)
        hw = hw_ref[pl.ds(start, tile_k), :]      # slice the resident HW slab
    else:
        hw = hw_ref[...]                          # streamed HW tile
    acc_ref[...] += jnp.dot(a, hw, preferred_element_type=jnp.float32)

    @pl.when(k == pl.num_programs(1) - 1)
    def _():
        o_ref[...] = jnp.maximum(acc_ref[...] + b_ref[...], 0.0).astype(o_ref.dtype)


# --------------------------------------------------------------------------- #
# Configuration
# --------------------------------------------------------------------------- #
def _pick_phase2_config(N, Fout_pad, a_itemsize, hw_itemsize, out_itemsize, budget):
    """Pick phase-2 tiling from the VMEM budget.

    Preference order:
      1. "resident": HW kept in VMEM, one dot per A row strip (no k axis, no
         accumulator, no init/finalize).  HW is DMA'd once total.
      2. "ktiled":   A tiled (tile_m, tile_k == tile_m) with f32 accumulator;
         HW resident when it fits, else streamed along k; triple-buffered A
         when headroom exists.
    Tiles are capped at 512 and, when N allows, chosen so the row grid has at
    least 2 tiles (keeps both v7x TensorCores busy under "parallel").
    """
    tiles = (512, 256, 128)
    bias_bytes = 2 * Fout_pad * 4

    for tm in tiles:
        if tm > 128 and N < 2 * tm:              # avoid gross padding / keep >=2 row tiles
            continue
        n_pad = _round_up(N, tm)
        need = (2 * tm * n_pad * a_itemsize       # A row strip, double-buffered
                + 2 * n_pad * Fout_pad * hw_itemsize   # HW slab (x2, conservative)
                + 2 * tm * Fout_pad * out_itemsize     # output tile
                + bias_bytes)
        if need <= budget:
            return dict(mode="resident", tile_m=tm, n_pad=n_pad)

    for tm in tiles:
        if tm > 128 and N < 2 * tm:
            continue
        tk = tm                                   # tile_k == tile_m -> n_pad divisible by both
        n_pad = _round_up(N, tm)
        base = (2 * tm * Fout_pad * out_itemsize
                + tm * Fout_pad * 4               # f32 accumulator scratch
                + bias_bytes)
        hw_res = 2 * n_pad * Fout_pad * hw_itemsize
        hw_stream = 2 * tk * Fout_pad * hw_itemsize
        for hw_resident, a_bufs in ((True, 3), (True, 2), (False, 3), (False, 2)):
            need = base + (hw_res if hw_resident else hw_stream) + a_bufs * tm * tk * a_itemsize
            if need <= budget:
                return dict(mode="ktiled", tile_m=tm, tile_k=tk, n_pad=n_pad,
                            hw_resident=hw_resident, a_buffers=a_bufs)

    tm = 128                                      # last resort: minimum tiles
    return dict(mode="ktiled", tile_m=tm, tile_k=tm, n_pad=_round_up(N, tm),
                hw_resident=False, a_buffers=2)


# --------------------------------------------------------------------------- #
# Public entry point
# --------------------------------------------------------------------------- #
def gcn_layer(H, A_norm, W, b, *, mxu_dtype=jnp.bfloat16, out_dtype=None,
              vmem_limit_bytes=None):
    """H: [N, Fin], A_norm: [N, N], W: [Fin, Fout], b: [Fout]
       -> ReLU(A_norm @ H @ W + b)."""
    N, Fin = H.shape
    Fin_w, Fout = W.shape
    assert Fin_w == Fin and A_norm.shape == (N, N) and b.shape == (Fout,)

    mxu_dtype = jnp.dtype(mxu_dtype)
    out_dtype = jnp.dtype(H.dtype if out_dtype is None else out_dtype)
    hw_itemsize = mxu_dtype.itemsize
    a_itemsize = jnp.dtype(A_norm.dtype).itemsize   # A streamed as-is, cast in-kernel
    out_itemsize = out_dtype.itemsize

    # Per-generation VMEM budget (v7x: 64 MiB physical, v5e/v6e: 128 MiB).
    if vmem_limit_bytes is None:
        try:
            phys = int(pltpu.get_tpu_info().vmem_capacity_bytes)
        except Exception:
            phys = 64 * 1024 * 1024                  # conservative: assume v7x
        vmem_limit_bytes = min(int(phys * 0.85), 112 * 1024 * 1024)
    budget = int(vmem_limit_bytes * 0.75)            # headroom for compiler scratch

    Fin_pad = _round_up(Fin, LANE)
    Fout_pad = _round_up(Fout, LANE)                 # lane-dense output -> unmasked vst

    cfg = _pick_phase2_config(N, Fout_pad, a_itemsize, hw_itemsize, out_itemsize, budget)
    tile_m, n_pad = cfg["tile_m"], cfg["n_pad"]

    # Zero-pad only when a dim is not tile-aligned; inputs stay in their
    # original dtype (casts happen inside the kernels -> no extra HBM pre-pass).
    H_p = _maybe_pad2d(H, n_pad, Fin_pad)
    A_p = _maybe_pad2d(A_norm, n_pad, n_pad)
    W_p = _maybe_pad2d(W, Fin_pad, Fout_pad)
    b_p = jnp.pad(b.astype(jnp.float32), (0, Fout_pad - Fout)).reshape(1, Fout_pad)

    # ---------------- phase 1: HW = H @ W  (computed once) ---------------- #
    p1_vmem = (2 * tile_m * Fin_pad * H_p.dtype.itemsize
               + 2 * Fin_pad * Fout_pad * W_p.dtype.itemsize
               + 2 * tile_m * Fout_pad * hw_itemsize)
    hw_cost = pl.CostEstimate(
        flops=2 * n_pad * Fin_pad * Fout_pad, transcendentals=0,
        bytes_accessed=(n_pad * Fin_pad + Fin_pad * Fout_pad) * H_p.dtype.itemsize
        + n_pad * Fout_pad * hw_itemsize)
    if p1_vmem <= budget:
        HW = pl.pallas_call(
            _hw_kernel,
            out_shape=jax.ShapeDtypeStruct((n_pad, Fout_pad), mxu_dtype),
            grid_spec=pltpu.PrefetchScalarGridSpec(
                num_scalar_prefetch=0,
                grid=(n_pad // tile_m,),
                in_specs=[
                    pl.BlockSpec((tile_m, Fin_pad), lambda i: (i, 0)),     # H row tile
                    pl.BlockSpec((Fin_pad, Fout_pad), lambda i: (0, 0)),   # W resident
                ],
                out_specs=pl.BlockSpec((tile_m, Fout_pad), lambda i: (i, 0)),
            ),
            compiler_params=pltpu.CompilerParams(
                dimension_semantics=("parallel",),
                vmem_limit_bytes=vmem_limit_bytes),
            cost_estimate=hw_cost,
        )(H_p, W_p)
    else:
        # TODO(synk): Fin-tiled Pallas variant for extreme Fin; XLA is already at
        # roofline for this tiny O(N*Fin*Fout) matmul, so delegate it instead of
        # blowing the v7x 64 MiB VMEM with a resident W.
        HW = jnp.dot(H_p.astype(mxu_dtype), W_p.astype(mxu_dtype),
                     preferred_element_type=jnp.float32).astype(mxu_dtype)

    # ----------- phase 2: out = ReLU(A_norm @ HW + b), HBM-bound ----------- #
    agg_cost = pl.CostEstimate(
        flops=2 * n_pad * n_pad * Fout_pad, transcendentals=0,
        bytes_accessed=(n_pad * n_pad * a_itemsize
                        + n_pad * Fout_pad * hw_itemsize
                        + n_pad * Fout_pad * out_itemsize
                        + Fout_pad * 4))

    if cfg["mode"] == "resident":
        grid = (n_pad // tile_m,)
        in_specs = [
            pl.BlockSpec((tile_m, n_pad), lambda i: (i, 0)),        # A row strip (streamed)
            pl.BlockSpec((n_pad, Fout_pad), lambda i: (0, 0)),      # HW resident (DMA'd once)
            pl.BlockSpec((1, Fout_pad), lambda i: (0, 0)),          # bias resident
        ]
        out_specs = pl.BlockSpec((tile_m, Fout_pad), lambda i: (i, 0))
        kernel = _agg_resident_kernel
        scratch = []
        dims = ("parallel",)
    else:
        tile_k = cfg["tile_k"]
        hw_resident = cfg["hw_resident"]
        grid = (n_pad // tile_m, n_pad // tile_k)
        a_kwargs = {}
        if cfg["a_buffers"] > 2:
            # Third buffer on the critical A stream when VMEM headroom exists.
            a_kwargs["pipeline_mode"] = pl.Buffered(cfg["a_buffers"])
        a_spec = pl.BlockSpec((tile_m, tile_k), lambda i, k: (i, k), **a_kwargs)
        if hw_resident:
            hw_spec = pl.BlockSpec((n_pad, Fout_pad), lambda i, k: (0, 0))
        else:
            hw_spec = pl.BlockSpec((tile_k, Fout_pad), lambda i, k: (k, 0))
        in_specs = [a_spec, hw_spec, pl.BlockSpec((1, Fout_pad), lambda i, k: (0, 0))]
        out_specs = pl.BlockSpec((tile_m, Fout_pad), lambda i, k: (i, 0))
        kernel = functools.partial(_agg_ktiled_kernel,
                                   hw_resident=hw_resident, tile_k=tile_k)
        scratch = [pltpu.VMEM((tile_m, Fout_pad), jnp.float32)]
        dims = ("parallel", "arbitrary")

    # TODO(synk): optional fp8(e4m3) A operand on v7x (values in [0,1]) to halve the
    # dominant HBM stream; needs accuracy validation against the 3e-2 tolerance.
    out_p = pl.pallas_call(
        kernel,
        out_shape=jax.ShapeDtypeStruct((n_pad, Fout_pad), out_dtype),
        grid_spec=pltpu.PrefetchScalarGridSpec(
            num_scalar_prefetch=0,
            grid=grid,
            in_specs=in_specs,
            out_specs=out_specs,
            scratch_shapes=scratch,
        ),
        compiler_params=pltpu.CompilerParams(
            dimension_semantics=dims,
            vmem_limit_bytes=vmem_limit_bytes),
        cost_estimate=agg_cost,
    )(A_p, HW, b_p)

    return out_p[:N, :Fout]


# --------------------------------------------------------------------------- #
# Demo / correctness check
# --------------------------------------------------------------------------- #
if __name__ == "__main__":
    key = jax.random.PRNGKey(0)
    k_h, k_a, k_w, k_b = jax.random.split(key, 4)

    N, Fin, Fout = 64, 32, 16

    # Node features
    H = jax.random.normal(k_h, (N, Fin), dtype=jnp.float32)

    # Symmetric-normalized adjacency with self-loops: D^{-1/2} (A + I) D^{-1/2}
    A_rand = (jax.random.uniform(k_a, (N, N)) < 0.1).astype(jnp.float32)
    A = jnp.maximum(A_rand, A_rand.T) + jnp.eye(N, dtype=jnp.float32)
    deg = jnp.sum(A, axis=1)
    d_inv_sqrt = 1.0 / jnp.sqrt(deg)
    A_norm = A * d_inv_sqrt[:, None] * d_inv_sqrt[None, :]

    # Parameters (mimic nn.Linear's uniform(-1/sqrt(Fin), 1/sqrt(Fin)) init)
    bound = 1.0 / jnp.sqrt(jnp.float32(Fin))
    W = jax.random.uniform(k_w, (Fin, Fout), minval=-bound, maxval=bound,
                           dtype=jnp.float32)
    b = jax.random.uniform(k_b, (Fout,), minval=-bound, maxval=bound,
                           dtype=jnp.float32)

    # Fast path: bf16 MXU operands (cast in-kernel), f32 accumulation + epilogue.
    out = jax.block_until_ready(gcn_layer(H, A_norm, W, b))

    # Exactness path: same kernels with f32 MXU operands (tight check).
    out_f32 = jax.block_until_ready(gcn_layer(H, A_norm, W, b, mxu_dtype=jnp.float32))

    # Pure-JAX reference
    ref = jnp.maximum(A_norm @ H @ W + b[None, :], 0.0)
    assert out.shape == (N, Fout)
    assert jnp.allclose(out_f32, ref, atol=1e-4, rtol=1e-4)
    assert jnp.allclose(out, ref, atol=3e-2, rtol=3e-2)

    print("KERNEL_OK")
</pallas_src>

<mosaic_0001>
module attributes {stable_mosaic.version = 11 : i64} {
  func.func @_hw_kernel(%arg0: i32, %arg1: memref<128x128xf32, #tpu.memory_space<vmem>>, %arg2: memref<128x128xf32, #tpu.memory_space<vmem>>, %arg3: memref<128x128xbf16, #tpu.memory_space<vmem>>) attributes {dimension_semantics = [#tpu.dimension_semantics<parallel>], iteration_bounds = array<i64: 1>, scalar_prefetch = 0 : i64, scratch_operands = 0 : i64, tpu.core_type = #tpu.core_type<tc>, window_params = [{transform_indices = @transform_0, window_bounds = array<i64: 128, 128>}, {pipeline_mode = #tpu.pipeline_mode<synchronous>, transform_indices = @transform_1, window_bounds = array<i64: 128, 128>}, {transform_indices = @transform_2, window_bounds = array<i64: 128, 128>}]} {
    %c0 = arith.constant 0 : index
    %c0_0 = arith.constant 0 : index
    %0 = vector.load %arg1[%c0, %c0_0] : memref<128x128xf32, #tpu.memory_space<vmem>>, vector<128x128xf32>
    %1 = arith.truncf %0 : vector<128x128xf32> to vector<128x128xbf16>
    %c0_1 = arith.constant 0 : index
    %c0_2 = arith.constant 0 : index
    %2 = vector.load %arg2[%c0_1, %c0_2] : memref<128x128xf32, #tpu.memory_space<vmem>>, vector<128x128xf32>
    %3 = arith.truncf %2 : vector<128x128xf32> to vector<128x128xbf16>
    %cst = arith.constant dense<0.000000e+00> : vector<128x128xf32>
    %4 = tpu.matmul %1, %3, %cst {dimension_numbers = #tpu.dot_dimension_numbers<[1], [0], [0], [1], [0, 0, 1, 1], [], []>} : vector<128x128xbf16>, vector<128x128xbf16>, vector<128x128xf32> -> vector<128x128xf32>
    %5 = arith.truncf %4 : vector<128x128xf32> to vector<128x128xbf16>
    %c0_3 = arith.constant 0 : index
    %c0_4 = arith.constant 0 : index
    %6 = vector.load %arg3[%c0_3, %c0_4] : memref<128x128xbf16, #tpu.memory_space<vmem>>, vector<128x128xbf16>
    tpu.vector_store %arg3[%c0_3, %c0_4], %5 {strides = array<i32>} : memref<128x128xbf16, #tpu.memory_space<vmem>>, vector<128x128xbf16>,
    return
  }
  func.func @transform_0(%arg0: i32) -> (i32, i32) {
    %c0_i32 = arith.constant 0 : i32
    %c0_i32_0 = arith.constant 0 : i32
    return %arg0, %c0_i32 : i32, i32
  }
  func.func @transform_1(%arg0: i32) -> (i32, i32) {
    %c0_i32 = arith.constant 0 : i32
    %c0_i32_0 = arith.constant 0 : i32
    %c0_i32_1 = arith.constant 0 : i32
    return %c0_i32, %c0_i32_0 : i32, i32
  }
  func.func @transform_2(%arg0: i32) -> (i32, i32) {
    %c0_i32 = arith.constant 0 : i32
    %c0_i32_0 = arith.constant 0 : i32
    return %arg0, %c0_i32 : i32, i32
  }
}

</mosaic_0001>

<bundles_post_ra>
// kernel: tpu_custom_call.1
= control target key start
LH: loop header
LB: loop body
LE: loop exit
PB: predicated region body
PF: predicated region fallthrough
CT: control target
= control target key end

     0   :  { %7 = vsyncpa [#allocation3], 0  ;;  %s564_s0 = inlined_call_operand.hbm [shape: f32[128,128], index: 0, kind: input, shape index: {}]   ;;  %s565_s1 = inlined_call_operand.hbm [shape: f32[128,128], index: 1, kind: input, shape index: {}]   ;;  %s566_s2 = inlined_call_operand.hbm [shape: bf16[128,128], index: 2, kind: output, shape index: {}]  }
   0x1   :  { %8 = vsyncpa [#allocation6], 0 }
   0x2   :  { %9 = vsyncpa [#allocation4], 0  ;;  %s506_s9 = smov [#allocation2]   ;;  %s434_s13 = scalar_lea.hbm %s564_s0, 2048 }
   0x3   :  { %s15_s10 = sshll.u32 %s506_s9, 4  ;;  %p435_p0 = scmp.ne.s32.totalorder %s564_s0, %s434_s13  ;;  %s16_s10 = int_to_ptr.vmem [resolvable:$true] %s15_s10 }
   0x4   :  { %p438_p1 = scmp.lt.u32.totalorder %s434_s13, %s564_s0 }
   0x6   :  { %p440_p2 = pnand %p438_p1, %p435_p0 }
   0x8   :  { %443 = shalt.err (!%p440_p2)
}
   0x9   :  { %s444_s18 = scalar_lea.vmem %s16_s10, 2048  ;;  %p449_p4 = scmp.lt.s32.totalorder %s16_s10, %s16_s10 }
   0xa   :  { %p445_p3 = scmp.ne.s32.totalorder %s16_s10, %s444_s18  ;;  %p450_p5 = scmp.lt.s32.totalorder %s444_s18, %s444_s18 }
   0xc   :  { %p451_p6 = por %p450_p5, %p449_p4 }
   0xe   :  { %p452_p7 = pnand %p451_p6, %p445_p3 }
  0x10   :  { %455 = shalt.err (!%p452_p7)
}
  0x11   :  { %s507_s19 = smov 128   ;;  %s508_s20 = smov 8  }
  0x12   :  { %21 = dma.hbm_to_vmem [thread:$0]  %s564_s0, 2048, %s16_s10, [#allocation3], %s507_s19, %s507_s19, %s508_s20  }
  0x13   :  { %s509_s23 = smov [#allocation5]   ;;  %s456_s27 = scalar_lea.hbm %s565_s1, 2048 }
  0x14   :  { %s27_s24 = sshll.u32 %s509_s23, 4  ;;  %p457_p8 = scmp.ne.s32.totalorder %s565_s1, %s456_s27  ;;  %s28_s24 = int_to_ptr.vmem [resolvable:$true] %s27_s24 }
  0x15   :  { %p460_p9 = scmp.lt.u32.totalorder %s456_s27, %s565_s1 }
  0x17   :  { %p462_p10 = pnand %p460_p9, %p457_p8 }
  0x19   :  { %465 = shalt.err (!%p462_p10)
}
  0x1a   :  { %s466_s4 = scalar_lea.vmem %s28_s24, 2048  ;;  %p471_p12 = scmp.lt.s32.totalorder %s28_s24, %s28_s24 }
  0x1b   :  { %p467_p11 = scmp.ne.s32.totalorder %s28_s24, %s466_s4  ;;  %p472_p13 = scmp.lt.s32.totalorder %s466_s4, %s466_s4 }
  0x1d   :  { %p473_p0 = por %p472_p13, %p471_p12 }
  0x1f   :  { %p474_p1 = pnand %p473_p0, %p467_p11 }
  0x21   :  { %477 = shalt.err (!%p474_p1)
}
  0x22   :  { %33 = dma.hbm_to_vmem [thread:$0]  %s565_s1, 2048, %s28_s24, [#allocation6], %s507_s19, %s507_s19, %s508_s20  }
  0x23   :  { %500 = dma.done.wait [#allocation3], 2048  }
  0x24   :  { %501 = vsyncadd [#allocation3], 4294965248 }
  0x25   :  { %502 = dma.done.wait [#allocation6], 2048  }
  0x26   :  { %503 = vsyncadd [#allocation6], 4294965248  ;;  %v65_v0 = vld [vmem:[#allocation5] sm:$0xff]  ;;  %v66_v1 = vld [vmem:[#allocation5 + $0x8] sm:$0xff]  ;;  %s510_s1 = smov [#allocation7]  }
  0x27   :  { %v67_v2 = vld [vmem:[#allocation5 + $0x10] sm:$0xff]  ;;  %v81_v3 = vpack.c.bf16 %v66_v1, %v65_v0  ;;  %v68_v4 = vld [vmem:[#allocation5 + $0x18] sm:$0xff]  ;;  %v69_v6 = vld [vmem:[#allocation5 + $0x20] sm:$0xff]  ;;  %s271_s6 = sshll.u32 %s510_s1, 4  ;;  %s272_s6 = int_to_ptr.vmem [resolvable:$true] %s271_s6 }
  0x28   :  { %v82_v5 = vpack.c.bf16 %v68_v4, %v67_v2  ;;  %v70_v7 = vld [vmem:[#allocation5 + $0x28] sm:$0xff]  ;;  %v71_v9 = vld [vmem:[#allocation5 + $0x30] sm:$0xff]  ;;  %v41_v10 = vld [vmem:[#allocation2] sm:$0xff]  ;;  %s478_s7 = scalar_lea.vmem %s272_s6, 1024  ;;  %p483_p3 = scmp.lt.s32.totalorder %s272_s6, %s272_s6 }
  0x29   :  { %379 = vmatprep.subr.bf16.mxu0 %v81_v3  ;;  %411 = vmatprep.subr.bf16.mxu1 %v81_v3  ;;  %v83_v8 = vpack.c.bf16 %v70_v7, %v69_v6  ;;  %v42_v11 = vld [vmem:[#allocation2 + $0x8] sm:$0xff]  ;;  %v72_v12 = vld [vmem:[#allocation5 + $0x38] sm:$0xff]  ;;  %v49_v14 = vld [vmem:[#allocation2 + $0x40] sm:$0xff]  ;;  %p479_p2 = scmp.ne.s32.totalorder %s272_s6, %s478_s7  ;;  %p484_p4 = scmp.lt.s32.totalorder %s478_s7, %s478_s7 }
  0x2a   :  { %380 = vmatpush3.bf16.msra.mxu0 %v81_v3  ;;  %419 = vmatpush3.bf16.msra.mxu1 %v81_v3  ;;  %v57_v13 = vpack.c.bf16 %v42_v11, %v41_v10  ;;  %v50_v15 = vld [vmem:[#allocation2 + $0x48] sm:$0xff]  ;;  %v84_v17 = vpack.c.bf16 %v72_v12, %v71_v9  ;;  %v73_v18 = vld [vmem:[#allocation5 + $0x40] sm:$0xff]  ;;  %v75_v21 = vld [vmem:[#allocation5 + $0x50] sm:$0xff] }
  0x2b   :  { %381 = vmatprep.subr.bf16.mxu0 %v82_v5  ;;  %412 = vmatprep.subr.bf16.mxu1 %v82_v5  ;;  %v61_v16 = vpack.c.bf16 %v50_v15, %v49_v14  ;;  %v74_v19 = vld [vmem:[#allocation5 + $0x48] sm:$0xff]  ;;  %v76_v22 = vld [vmem:[#allocation5 + $0x58] sm:$0xff]  ;;  %v77_v24 = vld [vmem:[#allocation5 + $0x60] sm:$0xff]  ;;  %p485_p5 = por %p484_p4, %p483_p3 }
  0x2c   :  { %395 = vmatprep.mubr.bf16.mxu0 %v57_v13  ;;  %v85_v20 = vpack.c.bf16 %v74_v19, %v73_v18  ;;  %v86_v23 = vpack.c.bf16 %v76_v22, %v75_v21  ;;  %v78_v25 = vld [vmem:[#allocation5 + $0x68] sm:$0xff]  ;;  %v79_v27 = vld [vmem:[#allocation5 + $0x70] sm:$0xff]  ;;  %v80_v28 = vld [vmem:[#allocation5 + $0x78] sm:$0xff] }
  0x2d   :  { %403 = vmatprep.mubr.bf16.mxu1 %v61_v16  ;;  %v87_v26 = vpack.c.bf16 %v78_v25, %v77_v24  ;;  %v88_v29 = vpack.c.bf16 %v80_v28, %v79_v27  ;;  %v43_v30 = vld [vmem:[#allocation2 + $0x10] sm:$0xff]  ;;  %v44_v31 = vld [vmem:[#allocation2 + $0x18] sm:$0xff]  ;;  %v45_v34 = vld [vmem:[#allocation2 + $0x20] sm:$0xff]  ;;  %p486_p6 = pnand %p485_p5, %p479_p2 }
  0x2e   :  { %382 = vmatpush3.bf16.msra.mxu0 %v82_v5  ;;  %420 = vmatpush3.bf16.msra.mxu1 %v82_v5  ;;  %v51_v32 = vld [vmem:[#allocation2 + $0x50] sm:$0xff]  ;;  %v52_v33 = vld [vmem:[#allocation2 + $0x58] sm:$0xff]  ;;  %v46_v35 = vld [vmem:[#allocation2 + $0x28] sm:$0xff]  ;;  %v58_v38 = vpack.c.bf16 %v44_v31, %v43_v30 }
  0x2f   :  { %383 = vmatprep.subr.bf16.mxu0 %v83_v8  ;;  %413 = vmatprep.subr.bf16.mxu1 %v83_v8  ;;  %v53_v36 = vld [vmem:[#allocation2 + $0x60] sm:$0xff]  ;;  %v54_v37 = vld [vmem:[#allocation2 + $0x68] sm:$0xff]  ;;  %v62_v39 = vpack.c.bf16 %v52_v33, %v51_v32  ;;  %v59_v40 = vpack.c.bf16 %v46_v35, %v45_v34  ;;  %v47_v42 = vld [vmem:[#allocation2 + $0x30] sm:$0xff] }
  0x30   :  { %v63_v41 = vpack.c.bf16 %v54_v37, %v53_v36  ;;  %v48_v43 = vld [vmem:[#allocation2 + $0x38] sm:$0xff]  ;;  %v55_v44 = vld [vmem:[#allocation2 + $0x70] sm:$0xff] }
  0x31   :  { %v56_v45 = vld [vmem:[#allocation2 + $0x78] sm:$0xff]  ;;  %v60_v46 = vpack.c.bf16 %v48_v43, %v47_v42 }
  0x32   :  { %384 = vmatpush3.bf16.msra.mxu0 %v83_v8  ;;  %421 = vmatpush3.bf16.msra.mxu1 %v83_v8  ;;  %v64_v47 = vpack.c.bf16 %v56_v45, %v55_v44 }
  0x33   :  { %385 = vmatprep.subr.bf16.mxu0 %v84_v17  ;;  %414 = vmatprep.subr.bf16.mxu1 %v84_v17 }
  0x36   :  { %386 = vmatpush3.bf16.msra.mxu0 %v84_v17  ;;  %422 = vmatpush3.bf16.msra.mxu1 %v84_v17 }
  0x37   :  { %387 = vmatprep.subr.bf16.mxu0 %v85_v20  ;;  %415 = vmatprep.subr.bf16.mxu1 %v85_v20 }
  0x3a   :  { %388 = vmatpush3.bf16.msra.mxu0 %v85_v20  ;;  %423 = vmatpush3.bf16.msra.mxu1 %v85_v20 }
  0x3b   :  { %389 = vmatprep.subr.bf16.mxu0 %v86_v23  ;;  %416 = vmatprep.subr.bf16.mxu1 %v86_v23 }
  0x3e   :  { %390 = vmatpush3.bf16.msra.mxu0 %v86_v23  ;;  %424 = vmatpush3.bf16.msra.mxu1 %v86_v23 }
  0x3f   :  { %391 = vmatprep.subr.bf16.mxu0 %v87_v26  ;;  %417 = vmatprep.subr.bf16.mxu1 %v87_v26 }
  0x42   :  { %392 = vmatpush3.bf16.msra.mxu0 %v87_v26  ;;  %425 = vmatpush3.bf16.msra.mxu1 %v87_v26 }
  0x43   :  { %393 = vmatprep.subr.bf16.mxu0 %v88_v29  ;;  %418 = vmatprep.subr.bf16.mxu1 %v88_v29 }
  0x46   :  { %394 = vmatpush3.bf16.msra.mxu0 %v88_v29  ;;  %426 = vmatpush3.bf16.msra.mxu1 %v88_v29 }
  0x49   :  { %396 = vmatmul.mubr.bf16.vlgmr.msra.gmra.mrb[0].mxu0 %v58_v38  ;;  %404 = vmatmul.mubr.bf16.vlgmr.msra.gmra.mrb[0].mxu1 %v62_v39 }
  0x4a   :  { %399 = vmatprep.mubr.bf16.mxu0 %v59_v40  ;;  %407 = vmatprep.mubr.bf16.mxu1 %v63_v41 }
  0x51   :  { %400 = vmatmul.mubr.bf16.gmra.mrb[4].mxu0 %v60_v46  ;;  %408 = vmatmul.mubr.bf16.gmra.mrb[4].mxu1 %v64_v47 }
 0x11c   :  { %v397_v48 = vpop.f32.mrb[0].mxu0  ;;  %v405_v49 = vpop.f32.mrb[0].mxu1 }
 0x11d   :  { %v123_v50 = vpop.f32.mrb[1].mxu0  ;;  %v155_v51 = vpop.f32.mrb[1].mxu1 }
 0x11e   :  { %v398_v52 = vpop.f32.mrb[2].mxu0  ;;  %v406_v53 = vpop.f32.mrb[2].mxu1 }
 0x11f   :  { %v324_v54 = vpack.c.bf16 %v398_v52, %v397_v48  ;;  %v344_v55 = vpack.c.bf16 %v406_v53, %v405_v49  ;;  %v126_v56 = vpop.f32.mrb[3].mxu0  ;;  %v158_v57 = vpop.f32.mrb[3].mxu1 }
 0x120   :  { %v319_v58 = vpack.c.bf16 %v126_v56, %v123_v50  ;;  %v339_v59 = vpack.c.bf16 %v158_v57, %v155_v51 }
 0x121   :  { %356 = vst [vmem:[#allocation7 + $0x8] sm:$0xff] %v324_v54   ;;  %360 = vst [vmem:[#allocation7 + $0x28] sm:$0xff] %v344_v55  }
 0x122   :  { %320 = vst [vmem:[#allocation7] sm:$0xff] %v319_v58   ;;  %359 = vst [vmem:[#allocation7 + $0x20] sm:$0xff] %v339_v59  }
 0x124   :  { %v401_v60 = vpop.f32.mrb[4].mxu0  ;;  %v409_v61 = vpop.f32.mrb[4].mxu1 }
 0x125   :  { %v139_v62 = vpop.f32.mrb[5].mxu0  ;;  %v171_v63 = vpop.f32.mrb[5].mxu1 }
 0x126   :  { %v402_v0 = vpop.f32.mrb[6].mxu0  ;;  %v410_v1 = vpop.f32.mrb[6].mxu1 }
 0x127   :  { %v334_v2 = vpack.c.bf16 %v402_v0, %v401_v60  ;;  %v354_v3 = vpack.c.bf16 %v410_v1, %v409_v61  ;;  %v142_v4 = vpop.f32.mrb[7].mxu0  ;;  %v174_v5 = vpop.f32.mrb[7].mxu1 }
 0x128   :  { %v329_v6 = vpack.c.bf16 %v142_v4, %v139_v62  ;;  %v349_v7 = vpack.c.bf16 %v174_v5, %v171_v63 }
 0x129   :  { %358 = vst [vmem:[#allocation7 + $0x18] sm:$0xff] %v334_v2   ;;  %362 = vst [vmem:[#allocation7 + $0x38] sm:$0xff] %v354_v3  }
 0x12a   :  { %357 = vst [vmem:[#allocation7 + $0x10] sm:$0xff] %v329_v6   ;;  %361 = vst [vmem:[#allocation7 + $0x30] sm:$0xff] %v349_v7  }
 0x12b   :  { %489 = shalt.err (!%p486_p6)
}
 0x12c   :  { %s490_s10 = scalar_lea.hbm %s566_s2, 1024 }
 0x12d   :  { %p491_p7 = scmp.ne.s32.totalorder %s566_s2, %s490_s10  ;;  %p494_p8 = scmp.lt.u32.totalorder %s490_s10, %s566_s2 }
 0x12f   :  { %p496_p9 = pnand %p494_p8, %p491_p7 }
 0x131   :  { %499 = shalt.err (!%p496_p9)
}
 0x132   :  { %s511_s15 = smov 64   ;;  %s512_s16 = smov 4  }
 0x133   :  { %277 = dma.vmem_to_hbm [thread:$0]  %s272_s6, 1024, %s566_s2, [#allocation4], %s511_s15, %s511_s15, %s512_s16  }
 0x134   :  { %504 = dma.done.wait [#allocation4], 1024  }
 0x135   :  { %505 = vsyncadd [#allocation4], 4294966272 }
 0x136   :  { %281 = vsyncpa [#allocation3], 1 }
 0x137   :  { %282 = vsyncpa [#allocation6], 1 }
 0x138   :  { %283 = vsyncpa [#allocation4], 1 }

</bundles_post_ra>
